<compile_context>
chip_gen: v7x
topology: tpu7x:2x2x1
jax: 0.10.0
libtpu: 0.0.40
codegen_flags: <defaults>
</compile_context>

<pallas_src>
import functools

import jax
import jax.numpy as jnp
from jax.experimental import pallas as pl
from jax.experimental.pallas import tpu as pltpu


def _round_up(x, m):
    return ((x + m - 1) // m) * m


def _embed_edge_kernel(x_ref, w_ref, b_ref, o_ref):
    # x_ref: (tile_m, K), w_ref: (K, Nout), b_ref: (1, Nout), o_ref: (tile_m, Nout)
    acc = jnp.dot(x_ref[...], w_ref[...], preferred_element_type=jnp.float32)
    o_ref[...] = (acc + b_ref[...]).astype(o_ref.dtype)


def _linear_pallas(x2d, w2d, b2d, tile_m, cost):
    """Tiled y = x2d @ w2d + b2d with row tiling only (K / Nout kept whole)."""
    m, k = x2d.shape
    nout = w2d.shape[1]
    grid = (m // tile_m,)
    return pl.pallas_call(
        _embed_edge_kernel,
        out_shape=jax.ShapeDtypeStruct((m, nout), x2d.dtype),
        grid_spec=pltpu.PrefetchScalarGridSpec(
            num_scalar_prefetch=0,
            grid=grid,
            in_specs=[
                pl.BlockSpec((tile_m, k), lambda i: (i, 0)),
                pl.BlockSpec((k, nout), lambda i: (0, 0)),
                pl.BlockSpec((1, nout), lambda i: (0, 0)),
            ],
            out_specs=pl.BlockSpec((tile_m, nout), lambda i: (i, 0)),
        ),
        compiler_params=pltpu.CompilerParams(
            dimension_semantics=("parallel",)
        ),
        cost_estimate=cost,
    )(x2d, w2d, b2d)


@functools.partial(jax.jit, static_argnames=("tile_n",))
def embed_edge_forward(x, weight_t, bias, *, tile_n=4096):
    """Pallas implementation of EmbedEdge.forward for input_dim > 0.

    x        : (N, input_dim)          float32
    weight_t : (input_dim, kernel_dim) float32 (PyTorch weight, transposed)
    bias     : (kernel_dim,)           float32
    returns  : (N, kernel_dim)         float32
    """
    n, din = x.shape
    dout = weight_t.shape[1]
    itemsize = jnp.dtype(x.dtype).itemsize

    if din <= 128 and 128 % din == 0:
        # ---- lane-dense packed path ----
        p = 128 // din                       # rows packed per 128-lane vreg row
        m_total = -(-n // p)                 # packed rows needed
        tile_m = min(_round_up(max(8, tile_n // p), 8), _round_up(m_total, 8))
        m_pad = _round_up(m_total, tile_m)
        n_pad = m_pad * p

        if n_pad != n:
            x = jnp.pad(x, ((0, n_pad - n), (0, 0)))
        x_packed = x.reshape(m_pad, p * din)                      # (m_pad, 128)
        # Block-diagonal weight: 8 (=P) copies of W_t on the diagonal.
        w_bd = jnp.kron(jnp.eye(p, dtype=weight_t.dtype), weight_t)  # (128, P*dout)
        b_tiled = jnp.tile(bias, p).reshape(1, p * dout)

        cost = pl.CostEstimate(
            flops=2 * n_pad * din * dout,
            transcendentals=0,
            bytes_accessed=itemsize * (n_pad * din + p * din * p * dout
                                       + n_pad * dout),
        )
        out = _linear_pallas(x_packed, w_bd, b_tiled, tile_m, cost)
        return out.reshape(n_pad, dout)[:n]

    # ---- general fallback path (input_dim does not divide 128) ----
    tile = min(_round_up(tile_n, 8), _round_up(n, 8))
    n_pad = _round_up(n, tile)
    if n_pad != n:
        x = jnp.pad(x, ((0, n_pad - n), (0, 0)))
    b2d = bias.reshape(1, dout)
    cost = pl.CostEstimate(
        flops=2 * n_pad * din * dout,
        transcendentals=0,
        bytes_accessed=itemsize * (n_pad * din + din * dout + n_pad * dout),
    )
    out = _linear_pallas(x, weight_t, b2d, tile, cost)
    return out[:n]


def embed_edge(x, weight_t=None, bias=None, input_dim=0, tile_n=4096):
    """Full EmbedEdge semantics, including the input_dim == 0 identity path."""
    if input_dim > 0:
        return embed_edge_forward(x, weight_t, bias, tile_n=tile_n)
    return x


def init_embed_edge_params(key, input_dim, kernel_dim):
    """Deterministic init matching nn.Linear's shapes (uniform, Kaiming-like)."""
    k_w, k_b = jax.random.split(key)
    bound = 1.0 / jnp.sqrt(jnp.float32(input_dim))
    # PyTorch stores weight as (kernel_dim, input_dim); we keep the transpose.
    weight = jax.random.uniform(
        k_w, (kernel_dim, input_dim), jnp.float32, -bound, bound
    )
    bias = jax.random.uniform(k_b, (kernel_dim,), jnp.float32, -bound, bound)
    return weight.T, bias  # (input_dim, kernel_dim), (kernel_dim,)


if __name__ == "__main__":
    key = jax.random.PRNGKey(0)

    # 1) Lane-dense path: 200 edges (not a multiple of 8 -> exercises padding),
    #    16 edge properties -> 32 dims.
    num_edges, input_dim, kernel_dim = 200, 16, 32
    k_x, k_p, k_x2, k_p2 = jax.random.split(key, 4)
    x = jax.random.normal(k_x, (num_edges, input_dim), jnp.float32)
    weight_t, bias = init_embed_edge_params(k_p, input_dim, kernel_dim)

    out = embed_edge(x, weight_t, bias, input_dim=input_dim)
    out = jax.block_until_ready(out)
    ref = x @ weight_t + bias
    assert out.shape == (num_edges, kernel_dim)
    assert jnp.allclose(out, ref, atol=1e-5, rtol=1e-5)

    # 2) Fallback path: input_dim that does not divide 128.
    n2, din2, dout2 = 100, 24, 32
    x2 = jax.random.normal(k_x2, (n2, din2), jnp.float32)
    w2_t, b2 = init_embed_edge_params(k_p2, din2, dout2)
    out2 = jax.block_until_ready(embed_edge(x2, w2_t, b2, input_dim=din2))
    ref2 = x2 @ w2_t + b2
    assert out2.shape == (n2, dout2)
    assert jnp.allclose(out2, ref2, atol=1e-5, rtol=1e-5)

    # 3) input_dim == 0 branch: identity passthrough.
    ident = embed_edge(x, input_dim=0)
    assert ident is x

    print("KERNEL_OK")
</pallas_src>

<mosaic_0001>
module attributes {stable_mosaic.version = 11 : i64} {
  func.func @_embed_edge_kernel(%arg0: i32, %arg1: memref<32x128xf32, #tpu.memory_space<vmem>>, %arg2: memref<128x256xf32, #tpu.memory_space<vmem>>, %arg3: memref<1x256xf32, #tpu.memory_space<vmem>>, %arg4: memref<32x256xf32, #tpu.memory_space<vmem>>) attributes {dimension_semantics = [#tpu.dimension_semantics<parallel>], iteration_bounds = array<i64: 1>, scalar_prefetch = 0 : i64, scratch_operands = 0 : i64, tpu.core_type = #tpu.core_type<tc>, window_params = [{transform_indices = @transform_0, window_bounds = array<i64: 32, 128>}, {pipeline_mode = #tpu.pipeline_mode<synchronous>, transform_indices = @transform_1, window_bounds = array<i64: 128, 256>}, {pipeline_mode = #tpu.pipeline_mode<synchronous>, transform_indices = @transform_2, window_bounds = array<i64: 1, 256>}, {transform_indices = @transform_3, window_bounds = array<i64: 32, 256>}]} {
    %c0 = arith.constant 0 : index
    %c0_0 = arith.constant 0 : index
    %0 = vector.load %arg1[%c0, %c0_0] : memref<32x128xf32, #tpu.memory_space<vmem>>, vector<32x128xf32>
    %c0_1 = arith.constant 0 : index
    %c0_2 = arith.constant 0 : index
    %1 = vector.load %arg2[%c0_1, %c0_2] : memref<128x256xf32, #tpu.memory_space<vmem>>, vector<128x256xf32>
    %cst = arith.constant dense<0.000000e+00> : vector<32x256xf32>
    %2 = tpu.matmul %0, %1, %cst {dimension_numbers = #tpu.dot_dimension_numbers<[1], [0], [0], [1], [0, 0, 1, 1], [], []>} : vector<32x128xf32>, vector<128x256xf32>, vector<32x256xf32> -> vector<32x256xf32>
    %c0_3 = arith.constant 0 : index
    %c0_4 = arith.constant 0 : index
    %3 = vector.load %arg3[%c0_3, %c0_4] : memref<1x256xf32, #tpu.memory_space<vmem>>, vector<1x256xf32>
    %4 = vector.broadcast %3 : vector<1x256xf32> to vector<32x256xf32>
    %5 = arith.addf %2, %4 : vector<32x256xf32>
    %c0_5 = arith.constant 0 : index
    %c0_6 = arith.constant 0 : index
    %6 = vector.load %arg4[%c0_5, %c0_6] : memref<32x256xf32, #tpu.memory_space<vmem>>, vector<32x256xf32>
    tpu.vector_store %arg4[%c0_5, %c0_6], %5 {strides = array<i32>} : memref<32x256xf32, #tpu.memory_space<vmem>>, vector<32x256xf32>,
    return
  }
  func.func @transform_0(%arg0: i32) -> (i32, i32) {
    %c0_i32 = arith.constant 0 : i32
    %c0_i32_0 = arith.constant 0 : i32
    return %arg0, %c0_i32 : i32, i32
  }
  func.func @transform_1(%arg0: i32) -> (i32, i32) {
    %c0_i32 = arith.constant 0 : i32
    %c0_i32_0 = arith.constant 0 : i32
    %c0_i32_1 = arith.constant 0 : i32
    return %c0_i32, %c0_i32_0 : i32, i32
  }
  func.func @transform_2(%arg0: i32) -> (i32, i32) {
    %c0_i32 = arith.constant 0 : i32
    %c0_i32_0 = arith.constant 0 : i32
    %c0_i32_1 = arith.constant 0 : i32
    return %c0_i32, %c0_i32_0 : i32, i32
  }
  func.func @transform_3(%arg0: i32) -> (i32, i32) {
    %c0_i32 = arith.constant 0 : i32
    %c0_i32_0 = arith.constant 0 : i32
    return %arg0, %c0_i32 : i32, i32
  }
}

</mosaic_0001>

<bundles_post_ra>
// kernel: tile.8
= control target key start
LH: loop header
LB: loop body
LE: loop exit
PB: predicated region body
PF: predicated region fallthrough
CT: control target
= control target key end

     0   :  { %s22_s0 = inlined_call_operand.vmem [shape: f32[32], index: 0, kind: input, shape index: {}]   ;;  %s23_s1 = inlined_call_operand.vmem [shape: f32[8,32], index: 1, kind: output, shape index: {}]  }
   0x1   :  { %v4_v0 = vld [vmem:[%s22_s0] ss:$0 sm:$0xff] }
   0x2   :  { %5 = vst [vmem:[%s23_s1] sm:$0xff] %v4_v0 }

// kernel: tile.9
= control target key start
LH: loop header
LB: loop body
LE: loop exit
PB: predicated region body
PF: predicated region fallthrough
CT: control target
= control target key end

     0   :  { %s7_s6 = smov 3  ;;  %s14_s9 = smov 3  ;;  %vm4_vm0 = vcmask 261120   ;;  %vm11_vm1 = vcmask 1048320   ;;  %vm18_vm2 = vcmask 785920   ;;  %vm25_vm3 = vcmask 523520   ;;  %s76_s0 = inlined_call_operand.vmem [shape: f32[8,32], index: 0, kind: input, shape index: {}]   ;;  %s77_s1 = inlined_call_operand.vmem [shape: f32[1,256], index: 1, kind: output, shape index: {}]  }
   0x1   :  { %v38_v0 = vld [vmem:[%s76_s0 + $0x3] ss:$4 sm:%s7_s6]   ;;  %s45_s10 = smov 96   ;;  %s21_s11 = smov 3  ;;  %v39_v1 = vld [vmem:[%s76_s0 + $0x2] ss:$4 sm:%s14_s9]  }
   0x2   :  { %9 = vrot.lane.b32.xlu0 %v38_v0, %s45_s10  ;;  %v40_v2 = vld [vmem:[%s76_s0 + $0x1] ss:$4 sm:%s21_s11]   ;;  %s2_s16 = smov 3  ;;  %s46_s17 = smov 32  }
   0x3   :  { %23 = vrot.lane.b32.xlu1 %v40_v2, %s46_s17  ;;  %v3_v3 = vld [vmem:[%s76_s0] ss:$4 sm:%s2_s16]   ;;  %s47_s0 = smov 64  }
   0x4   :  { %5 = vst.msk [vmem:[#allocation0] ss:$8 sm:$0x3] %vm4_vm0, %v3_v3  }
   0x6   :  { %16 = vrot.lane.b32.xlu0 %v39_v1, %s47_s0 }
  0x74   :  { %v10_v4 = vpop.permute.xlu0 %9  }
  0x75   :  { %12 = vst.msk [vmem:[#allocation0] ss:$8 sm:$0x3] %vm11_vm1, %v10_v4   ;;  %v24_v5 = vpop.permute.xlu1 %23  }
  0x78   :  { %v17_v6 = vpop.permute.xlu0 %16  }
  0x79   :  { %19 = vst.msk [vmem:[#allocation0] ss:$8 sm:$0x3] %vm18_vm2, %v17_v6  }
  0x7a   :  { %26 = vst.msk [vmem:[#allocation0] ss:$8 sm:$0x3] %vm25_vm3, %v24_v5  }
  0x81   :  { %v30_v7 = vld [vmem:[#allocation0] sm:$0x1]  ;;  %v34_v8 = vld [vmem:[#allocation0 + $0x8] sm:$0x1] }
  0x82   :  { %32 = vst [vmem:[%s77_s1] sm:$0x1] %v30_v7  ;;  %41 = vst [vmem:[%s77_s1 + $0x1] sm:$0x1] %v34_v8 }

// kernel: embed_edge_forward.1
= control target key start
LH: loop header
LB: loop body
LE: loop exit
PB: predicated region body
PF: predicated region fallthrough
CT: control target
= control target key end

     0   :  { %v212_v3 = vmov 0.0   ;;  %v52_v53 = vlaneseq  ;;  %s372_s1 = inlined_call_operand.vmem [shape: f32[128,256], index: 1, kind: input, shape index: {}]   ;;  %s373_s0 = inlined_call_operand.vmem [shape: f32[32,128], index: 0, kind: input, shape index: {}]   ;;  %s374_s2 = inlined_call_operand.vmem [shape: f32[1,256], index: 2, kind: input, shape index: {}]   ;;  %s375_s3 = inlined_call_operand.vmem [shape: f32[32,256], index: 3, kind: output, shape index: {}]  }
   0x1   :  { %v19_v0 = vld [vmem:[%s372_s1 + $0x8] sm:$0xff]  ;;  %v21_v1 = vld [vmem:[%s372_s1 + $0x18] sm:$0xff]  ;;  %v18_v2 = vld [vmem:[%s372_s1] sm:$0xff]  ;;  %126 = vmatprep.mubr.f32.mxu0 %v212_v3  ;;  %138 = vmatprep.mubr.f32.mxu1 %v212_v3 }
   0x2   :  { %v163_v4 = vpack.c.bf16 %v21_v1, %v19_v0  ;;  %v20_v5 = vld [vmem:[%s372_s1 + $0x10] sm:$0xff]  ;;  %v23_v6 = vld [vmem:[%s372_s1 + $0x28] sm:$0xff]  ;;  %v25_v7 = vld [vmem:[%s372_s1 + $0x38] sm:$0xff]  ;;  %v53_v54 = vshrl.u32 %v52_v53, 7 }
   0x3   :  { %v165_v8 = vpack.c.bf16 %v20_v5, %v18_v2  ;;  %v167_v9 = vpack.c.bf16 %v25_v7, %v23_v6  ;;  %v22_v10 = vld [vmem:[%s372_s1 + $0x20] sm:$0xff]  ;;  %v24_v11 = vld [vmem:[%s372_s1 + $0x30] sm:$0xff]  ;;  %v27_v12 = vld [vmem:[%s372_s1 + $0x48] sm:$0xff] }
   0x4   :  { %164 = vmatprep.subr.bf16.mxu0 %v163_v4  ;;  %195 = vmatprep.subr.bf16.mxu1 %v163_v4  ;;  %v29_v13 = vld [vmem:[%s372_s1 + $0x58] sm:$0xff]  ;;  %v169_v14 = vpack.c.bf16 %v24_v11, %v22_v10  ;;  %v26_v16 = vld [vmem:[%s372_s1 + $0x40] sm:$0xff]  ;;  %v28_v17 = vld [vmem:[%s372_s1 + $0x50] sm:$0xff]  ;;  %v54_v55 = vsub.s32 0, %v53_v54  ;;  %v58_v57 = vsub.s32 1, %v53_v54 }
   0x5   :  { %166 = vmatpush1.bf16.msra.mxu0 %v165_v8  ;;  %203 = vmatpush1.bf16.msra.mxu1 %v165_v8  ;;  %v171_v15 = vpack.c.bf16 %v29_v13, %v27_v12  ;;  %v31_v18 = vld [vmem:[%s372_s1 + $0x68] sm:$0xff]  ;;  %v33_v19 = vld [vmem:[%s372_s1 + $0x78] sm:$0xff]  ;;  %v173_v20 = vpack.c.bf16 %v28_v17, %v26_v16  ;;  %v30_v22 = vld [vmem:[%s372_s1 + $0x60] sm:$0xff] }
   0x6   :  { %168 = vmatprep.subr.bf16.mxu0 %v167_v9  ;;  %196 = vmatprep.subr.bf16.mxu1 %v167_v9  ;;  %v175_v21 = vpack.c.bf16 %v33_v19, %v31_v18  ;;  %v32_v23 = vld [vmem:[%s372_s1 + $0x70] sm:$0xff]  ;;  %v35_v24 = vld [vmem:[%s372_s1 + $0x88] sm:$0xff]  ;;  %v37_v25 = vld [vmem:[%s372_s1 + $0x98] sm:$0xff] }
   0x7   :  { %v177_v26 = vpack.c.bf16 %v32_v23, %v30_v22  ;;  %v179_v27 = vpack.c.bf16 %v37_v25, %v35_v24  ;;  %v34_v28 = vld [vmem:[%s372_s1 + $0x80] sm:$0xff]  ;;  %v36_v29 = vld [vmem:[%s372_s1 + $0x90] sm:$0xff]  ;;  %v39_v30 = vld [vmem:[%s372_s1 + $0xa8] sm:$0xff] }
   0x8   :  { %v41_v31 = vld [vmem:[%s372_s1 + $0xb8] sm:$0xff]  ;;  %v181_v32 = vpack.c.bf16 %v36_v29, %v34_v28  ;;  %v38_v34 = vld [vmem:[%s372_s1 + $0xa0] sm:$0xff]  ;;  %v40_v35 = vld [vmem:[%s372_s1 + $0xb0] sm:$0xff] }
   0x9   :  { %170 = vmatpush1.bf16.msra.mxu0 %v169_v14  ;;  %204 = vmatpush1.bf16.msra.mxu1 %v169_v14  ;;  %v183_v33 = vpack.c.bf16 %v41_v31, %v39_v30  ;;  %v43_v36 = vld [vmem:[%s372_s1 + $0xc8] sm:$0xff]  ;;  %v45_v37 = vld [vmem:[%s372_s1 + $0xd8] sm:$0xff]  ;;  %v185_v38 = vpack.c.bf16 %v40_v35, %v38_v34  ;;  %v42_v40 = vld [vmem:[%s372_s1 + $0xc0] sm:$0xff] }
   0xa   :  { %172 = vmatprep.subr.bf16.mxu0 %v171_v15  ;;  %197 = vmatprep.subr.bf16.mxu1 %v171_v15  ;;  %v187_v39 = vpack.c.bf16 %v45_v37, %v43_v36  ;;  %v44_v41 = vld [vmem:[%s372_s1 + $0xd0] sm:$0xff]  ;;  %v47_v42 = vld [vmem:[%s372_s1 + $0xe8] sm:$0xff]  ;;  %v49_v43 = vld [vmem:[%s372_s1 + $0xf8] sm:$0xff] }
   0xb   :  { %v189_v44 = vpack.c.bf16 %v44_v41, %v42_v40  ;;  %v191_v45 = vpack.c.bf16 %v49_v43, %v47_v42  ;;  %v46_v46 = vld [vmem:[%s372_s1 + $0xe0] sm:$0xff]  ;;  %v48_v47 = vld [vmem:[%s372_s1 + $0xf0] sm:$0xff]  ;;  %v15_v51 = vld [vmem:[%s373_s0 + $0x8] sm:$0xff] }
   0xc   :  { %v193_v48 = vpack.c.bf16 %v48_v47, %v46_v46  ;;  %v14_v49 = vld [vmem:[%s373_s0] sm:$0xff]  ;;  %v16_v50 = vld [vmem:[%s373_s0 + $0x10] sm:$0xff]  ;;  %v17_v52 = vld [vmem:[%s373_s0 + $0x18] sm:$0xff] }
   0xd   :  { %174 = vmatpush1.bf16.msra.mxu0 %v173_v20  ;;  %205 = vmatpush1.bf16.msra.mxu1 %v173_v20  ;;  %v50_v56 = vld [vmem:[%s374_s2] sm:$0x3] }
   0xe   :  { %176 = vmatprep.subr.bf16.mxu0 %v175_v21  ;;  %198 = vmatprep.subr.bf16.mxu1 %v175_v21  ;;  %v55_v58 = vrot.slane %v50_v56, %v54_v55  ;;  %v59_v59 = vrot.slane %v50_v56, %v58_v57 }
  0x11   :  { %178 = vmatpush1.bf16.msra.mxu0 %v177_v26  ;;  %206 = vmatpush1.bf16.msra.mxu1 %v177_v26 }
  0x12   :  { %180 = vmatprep.subr.bf16.mxu0 %v179_v27  ;;  %199 = vmatprep.subr.bf16.mxu1 %v179_v27 }
  0x15   :  { %182 = vmatpush1.bf16.msra.mxu0 %v181_v32  ;;  %207 = vmatpush1.bf16.msra.mxu1 %v181_v32 }
  0x16   :  { %184 = vmatprep.subr.bf16.mxu0 %v183_v33  ;;  %200 = vmatprep.subr.bf16.mxu1 %v183_v33 }
  0x19   :  { %186 = vmatpush1.bf16.msra.mxu0 %v185_v38  ;;  %208 = vmatpush1.bf16.msra.mxu1 %v185_v38 }
  0x1a   :  { %188 = vmatprep.subr.bf16.mxu0 %v187_v39  ;;  %201 = vmatprep.subr.bf16.mxu1 %v187_v39 }
  0x1d   :  { %190 = vmatpush1.bf16.msra.mxu0 %v189_v44  ;;  %209 = vmatpush1.bf16.msra.mxu1 %v189_v44 }
  0x1e   :  { %192 = vmatprep.subr.bf16.mxu0 %v191_v45  ;;  %202 = vmatprep.subr.bf16.mxu1 %v191_v45 }
  0x21   :  { %194 = vmatpush1.bf16.msra.mxu0 %v193_v48  ;;  %210 = vmatpush1.bf16.msra.mxu1 %v193_v48 }
  0x24   :  { %127 = vmatmul.mubr.f32.vlgmr.msra.gmra.mrb[0].mxu0 %v14_v49  ;;  %139 = vmatmul.mubr.f32.vlgmr.msra.gmra.mrb[0].mxu1 %v16_v50 }
  0x25   :  { %132 = vmatprep.mubr.f32.mxu0 %v212_v3  ;;  %144 = vmatprep.mubr.f32.mxu1 %v212_v3 }
  0x28   :  { %133 = vmatmul.mubr.f32.gmra.mrb[2].mxu0 %v15_v51  ;;  %145 = vmatmul.mubr.f32.gmra.mrb[2].mxu1 %v17_v52 }
  0xf7   :  { %v128_v60 = vpop.f32.mrb[0].mxu0  ;;  %v140_v61 = vpop.f32.mrb[0].mxu1 }
  0xf8   :  { %v129_v62 = vadd.f32 %v128_v60, %v55_v58  ;;  %v141_v63 = vadd.f32 %v140_v61, %v55_v58  ;;  %v130_v0 = vpop.f32.mrb[1].mxu0  ;;  %v142_v1 = vpop.f32.mrb[1].mxu1 }
  0xf9   :  { %v131_v2 = vadd.f32 %v130_v0, %v59_v59  ;;  %v143_v3 = vadd.f32 %v142_v1, %v59_v59 }
  0xfa   :  { %151 = vst [vmem:[%s375_s3] sm:$0xff] %v129_v62  ;;  %155 = vst [vmem:[%s375_s3 + $0x20] sm:$0xff] %v141_v63 }
  0xfb   :  { %152 = vst [vmem:[%s375_s3 + $0x8] sm:$0xff] %v131_v2  ;;  %156 = vst [vmem:[%s375_s3 + $0x28] sm:$0xff] %v143_v3  ;;  %v134_v4 = vpop.f32.mrb[2].mxu0  ;;  %v146_v5 = vpop.f32.mrb[2].mxu1 }
  0xfc   :  { %v135_v6 = vadd.f32 %v134_v4, %v55_v58  ;;  %v147_v7 = vadd.f32 %v146_v5, %v55_v58  ;;  %v136_v8 = vpop.f32.mrb[3].mxu0  ;;  %v148_v9 = vpop.f32.mrb[3].mxu1 }
  0xfd   :  { %v137_v10 = vadd.f32 %v136_v8, %v59_v59  ;;  %v149_v11 = vadd.f32 %v148_v9, %v59_v59 }
  0xfe   :  { %153 = vst [vmem:[%s375_s3 + $0x10] sm:$0xff] %v135_v6  ;;  %157 = vst [vmem:[%s375_s3 + $0x30] sm:$0xff] %v147_v7 }
  0xff   :  { %154 = vst [vmem:[%s375_s3 + $0x18] sm:$0xff] %v137_v10  ;;  %158 = vst [vmem:[%s375_s3 + $0x38] sm:$0xff] %v149_v11 }

</bundles_post_ra>
